<compile_context>
chip_gen: v6e
topology: v6e:2x2x1
jax: 0.10.0
libtpu: 0.0.40
codegen_flags: <defaults>
</compile_context>

<pallas_src>
import math
from functools import partial

import jax
import jax.numpy as jnp
from jax.experimental import pallas as pl
from jax.experimental.pallas import tpu as pltpu

_SMOOTH = 1e-6
_LANES = 128
_SUBLANES = 8
_TARGET_BLOCK_BYTES = 1 << 20   # ~1 MiB per input per block (in input dtype)
_MAX_TILE_ROWS = 8192           # hard cap (guards e.g. int8 targets)
_NUM_SHARDS = 2                 # v7x: one per TensorCore; serial on v5e/v6e


def _cdiv(a: int, b: int) -> int:
    return (a + b - 1) // b


def _dice_kernel(p_ref, t_ref, acc_ref, *, total, tile_rows, tiles_per_shard,
                 needs_mask):
    s = pl.program_id(0)   # shard axis (parallel)
    i = pl.program_id(1)   # row-tile within shard (arbitrary / reduction)

    @pl.when(i == 0)
    def _init():
        acc_ref[...] = jnp.zeros_like(acc_ref)

    x = p_ref[...].astype(jnp.float32)
    t = t_ref[...].astype(jnp.float32)
    # sigmoid via tanh: a single EUP push per vreg instead of exp + reciprocal.
    p = 0.5 * jnp.tanh(0.5 * x) + 0.5

    if needs_mask:
        # Intended (unclamped) global tile index.  Everything whose flat index
        # is >= total (wrapper pad, partial last block, over-committed shard
        # tiles whose index_map was clamped) is zeroed out.
        g = s * tiles_per_shard + i
        row = jax.lax.broadcasted_iota(jnp.int32, p.shape, 0)
        col = jax.lax.broadcasted_iota(jnp.int32, p.shape, 1)
        idx = (g * tile_rows + row) * _LANES + col   # int32: fine below ~2^31 elems
        mask = idx < total
        p = jnp.where(mask, p, 0.0)
        t = jnp.where(mask, t, 0.0)

    # Vreg-wise partial sums: (tile_rows,128) -> (tile_rows/8, 8, 128) -> (8,128).
    pt = (p * t).reshape(-1, _SUBLANES, _LANES).sum(axis=0)
    ps = p.reshape(-1, _SUBLANES, _LANES).sum(axis=0)
    ts = t.reshape(-1, _SUBLANES, _LANES).sum(axis=0)

    acc_ref[0, 0, :, :] += pt
    acc_ref[0, 1, :, :] += ps
    acc_ref[0, 2, :, :] += ts


def global_dice_loss(preds: jax.Array, targets: jax.Array) -> jax.Array:
    """Pallas implementation of GlobalDiceLoss.forward; returns an f32 scalar."""
    assert preds.shape == targets.shape
    total = math.prod(preds.shape)

    p = preds.reshape(-1)
    t = targets.reshape(-1)

    # Pad (only when needed) so the flat length is a multiple of 8*128.  The
    # pad region is masked inside the kernel, so the pad value is irrelevant.
    chunk = _SUBLANES * _LANES
    padded_total = _cdiv(total, chunk) * chunk
    if padded_total != total:
        p = jnp.pad(p, (0, padded_total - total))
        t = jnp.pad(t, (0, padded_total - total))

    rows = padded_total // _LANES          # multiple of 8

    # Dtype-aware tile size: ~1 MiB per input per block.
    max_itemsize = max(jnp.dtype(preds.dtype).itemsize,
                       jnp.dtype(targets.dtype).itemsize)
    max_tile_rows = _TARGET_BLOCK_BYTES // (_LANES * max_itemsize)
    max_tile_rows = max(_SUBLANES,
                        min(_MAX_TILE_ROWS,
                            (max_tile_rows // _SUBLANES) * _SUBLANES))
    tile_rows = min(max_tile_rows, rows)   # multiple of 8, <= rows

    num_tiles = _cdiv(rows, tile_rows)
    shards = max(1, min(_NUM_SHARDS, num_tiles))
    tiles_per_shard = _cdiv(num_tiles, shards)
    covered = shards * tiles_per_shard * tile_rows * _LANES
    needs_mask = covered != total

    p2d = p.reshape(rows, _LANES)
    t2d = t.reshape(rows, _LANES)

    if shards * tiles_per_shard == num_tiles:
        def in_map(s, i):
            return (s * tiles_per_shard + i, 0)
    else:
        def in_map(s, i):
            # Over-committed shard tiles get clamped to a valid block; their
            # contribution is zeroed by the in-kernel mask.
            return (jnp.minimum(s * tiles_per_shard + i, num_tiles - 1), 0)

    kernel = partial(_dice_kernel, total=total, tile_rows=tile_rows,
                     tiles_per_shard=tiles_per_shard, needs_mask=needs_mask)

    partials = pl.pallas_call(
        kernel,
        out_shape=jax.ShapeDtypeStruct((shards, 3, _SUBLANES, _LANES),
                                       jnp.float32),
        grid_spec=pltpu.PrefetchScalarGridSpec(
            num_scalar_prefetch=0,
            grid=(shards, tiles_per_shard),
            in_specs=[
                pl.BlockSpec((tile_rows, _LANES), in_map),
                pl.BlockSpec((tile_rows, _LANES), in_map),
            ],
            out_specs=pl.BlockSpec((1, 3, _SUBLANES, _LANES),
                                   lambda s, i: (s, 0, 0, 0)),
        ),
        compiler_params=pltpu.CompilerParams(
            dimension_semantics=("parallel", "arbitrary"),
            vmem_limit_bytes=32 * 1024 * 1024,
        ),
    )(p2d, t2d)

    sums = partials.sum(axis=(0, 2, 3))    # [sum(p*t), sum(p), sum(t)]
    ctp, psum, tsum = sums[0], sums[1], sums[2]
    cfp = psum - ctp                       # == sum(p*(1-t)) algebraically
    c_precision = ctp / (ctp + cfp + _SMOOTH)
    c_recall = ctp / (tsum + _SMOOTH)
    dice = 2.0 * (c_precision * c_recall) / (c_precision + c_recall + _SMOOTH)
    return 1.0 - dice


def _reference(preds, targets):
    p = jax.nn.sigmoid(preds.astype(jnp.float32))
    t = targets.astype(jnp.float32)
    y_true_count = t.sum()
    ctp = (p * t).sum()
    cfp = (p * (1.0 - t)).sum()
    c_precision = ctp / (ctp + cfp + _SMOOTH)
    c_recall = ctp / (y_true_count + _SMOOTH)
    dice = 2.0 * (c_precision * c_recall) / (c_precision + c_recall + _SMOOTH)
    return 1.0 - dice


if __name__ == "__main__":
    key = jax.random.PRNGKey(0)
    k1, k2 = jax.random.split(key)
    # NCHW logits and binary targets — the shapes the loss sees in training.
    preds = jax.random.normal(k1, (2, 4, 16, 16), dtype=jnp.float32)
    targets = (jax.random.uniform(k2, (2, 4, 16, 16)) > 0.5).astype(jnp.float32)

    loss = global_dice_loss(preds, targets)
    jax.block_until_ready(loss)

    ref = _reference(preds, targets)
    assert jnp.allclose(loss, ref, atol=2e-5, rtol=2e-5), (loss, ref)
    print("KERNEL_OK")
</pallas_src>

<mosaic_0001>
module attributes {stable_mosaic.version = 11 : i64} {
  func.func @_dice_kernel(%arg0: i32, %arg1: i32, %arg2: memref<16x128xf32, #tpu.memory_space<vmem>>, %arg3: memref<16x128xf32, #tpu.memory_space<vmem>>, %arg4: memref<1x3x8x128xf32, #tpu.memory_space<vmem>>) attributes {dimension_semantics = [#tpu.dimension_semantics<parallel>, #tpu.dimension_semantics<arbitrary>], iteration_bounds = array<i64: 1, 1>, scalar_prefetch = 0 : i64, scratch_operands = 0 : i64, tpu.core_type = #tpu.core_type<tc>, window_params = [{transform_indices = @transform_0, window_bounds = array<i64: 16, 128>}, {transform_indices = @transform_1, window_bounds = array<i64: 16, 128>}, {transform_indices = @transform_2, window_bounds = array<i64: 1, 3, 8, 128>}]} {
    %c0_i32 = arith.constant 0 : i32
    %0 = arith.cmpi eq, %arg1, %c0_i32 : i32
    %1 = arith.extui %0 : i1 to i32
    %c0_i32_0 = arith.constant 0 : i32
    %2 = arith.cmpi ne, %1, %c0_i32_0 : i32
    scf.if %2 {
      %cst_31 = arith.constant 0.000000e+00 : f32
      %37 = vector.broadcast %cst_31 : f32 to vector<1x3x8x128xf32>
      %c0_32 = arith.constant 0 : index
      %c0_33 = arith.constant 0 : index
      %c0_34 = arith.constant 0 : index
      %c0_35 = arith.constant 0 : index
      %38 = vector.load %arg4[%c0_32, %c0_33, %c0_34, %c0_35] : memref<1x3x8x128xf32, #tpu.memory_space<vmem>>, vector<1x3x8x128xf32>
      tpu.vector_store %arg4[%c0_32, %c0_33, %c0_34, %c0_35], %37 {strides = array<i32>} : memref<1x3x8x128xf32, #tpu.memory_space<vmem>>, vector<1x3x8x128xf32>,
    } else {
    }
    %c0 = arith.constant 0 : index
    %c0_1 = arith.constant 0 : index
    %3 = vector.load %arg2[%c0, %c0_1] : memref<16x128xf32, #tpu.memory_space<vmem>>, vector<16x128xf32>
    %c0_2 = arith.constant 0 : index
    %c0_3 = arith.constant 0 : index
    %4 = vector.load %arg3[%c0_2, %c0_3] : memref<16x128xf32, #tpu.memory_space<vmem>>, vector<16x128xf32>
    %cst = arith.constant 5.000000e-01 : f32
    %5 = vector.broadcast %cst : f32 to vector<16x128xf32>
    %6 = arith.mulf %5, %3 : vector<16x128xf32>
    %7 = math.tanh %6 : vector<16x128xf32>
    %cst_4 = arith.constant 5.000000e-01 : f32
    %8 = vector.broadcast %cst_4 : f32 to vector<16x128xf32>
    %9 = arith.mulf %8, %7 : vector<16x128xf32>
    %cst_5 = arith.constant 5.000000e-01 : f32
    %10 = vector.broadcast %cst_5 : f32 to vector<16x128xf32>
    %11 = arith.addf %9, %10 : vector<16x128xf32>
    %12 = arith.mulf %11, %4 : vector<16x128xf32>
    %13 = vector.shape_cast %12 : vector<16x128xf32> to vector<2x8x128xf32>
    %cst_6 = arith.constant dense<0.000000e+00> : vector<8x128xf32>
    %14 = vector.multi_reduction <add>, %13, %cst_6 [0] : vector<2x8x128xf32> to vector<8x128xf32>
    %15 = vector.shape_cast %11 : vector<16x128xf32> to vector<2x8x128xf32>
    %cst_7 = arith.constant dense<0.000000e+00> : vector<8x128xf32>
    %16 = vector.multi_reduction <add>, %15, %cst_7 [0] : vector<2x8x128xf32> to vector<8x128xf32>
    %17 = vector.shape_cast %4 : vector<16x128xf32> to vector<2x8x128xf32>
    %cst_8 = arith.constant dense<0.000000e+00> : vector<8x128xf32>
    %18 = vector.multi_reduction <add>, %17, %cst_8 [0] : vector<2x8x128xf32> to vector<8x128xf32>
    %c0_9 = arith.constant 0 : index
    %c0_10 = arith.constant 0 : index
    %c0_11 = arith.constant 0 : index
    %c0_12 = arith.constant 0 : index
    %19 = vector.load %arg4[%c0_9, %c0_10, %c0_11, %c0_12] : memref<1x3x8x128xf32, #tpu.memory_space<vmem>>, vector<1x1x8x128xf32>
    %20 = vector.shape_cast %19 : vector<1x1x8x128xf32> to vector<8x128xf32>
    %21 = arith.addf %20, %14 : vector<8x128xf32>
    %c0_13 = arith.constant 0 : index
    %c0_14 = arith.constant 0 : index
    %c0_15 = arith.constant 0 : index
    %c0_16 = arith.constant 0 : index
    %22 = vector.load %arg4[%c0_13, %c0_14, %c0_15, %c0_16] : memref<1x3x8x128xf32, #tpu.memory_space<vmem>>, vector<1x1x8x128xf32>
    %23 = vector.shape_cast %22 : vector<1x1x8x128xf32> to vector<8x128xf32>
    %24 = vector.shape_cast %21 : vector<8x128xf32> to vector<1x1x8x128xf32>
    tpu.vector_store %arg4[%c0_13, %c0_14, %c0_15, %c0_16], %24 {strides = array<i32>} : memref<1x3x8x128xf32, #tpu.memory_space<vmem>>, vector<1x1x8x128xf32>,
    %c0_17 = arith.constant 0 : index
    %c1 = arith.constant 1 : index
    %c0_18 = arith.constant 0 : index
    %c0_19 = arith.constant 0 : index
    %25 = vector.load %arg4[%c0_17, %c1, %c0_18, %c0_19] : memref<1x3x8x128xf32, #tpu.memory_space<vmem>>, vector<1x1x8x128xf32>
    %26 = vector.shape_cast %25 : vector<1x1x8x128xf32> to vector<8x128xf32>
    %27 = arith.addf %26, %16 : vector<8x128xf32>
    %c0_20 = arith.constant 0 : index
    %c1_21 = arith.constant 1 : index
    %c0_22 = arith.constant 0 : index
    %c0_23 = arith.constant 0 : index
    %28 = vector.load %arg4[%c0_20, %c1_21, %c0_22, %c0_23] : memref<1x3x8x128xf32, #tpu.memory_space<vmem>>, vector<1x1x8x128xf32>
    %29 = vector.shape_cast %28 : vector<1x1x8x128xf32> to vector<8x128xf32>
    %30 = vector.shape_cast %27 : vector<8x128xf32> to vector<1x1x8x128xf32>
    tpu.vector_store %arg4[%c0_20, %c1_21, %c0_22, %c0_23], %30 {strides = array<i32>} : memref<1x3x8x128xf32, #tpu.memory_space<vmem>>, vector<1x1x8x128xf32>,
    %c0_24 = arith.constant 0 : index
    %c2 = arith.constant 2 : index
    %c0_25 = arith.constant 0 : index
    %c0_26 = arith.constant 0 : index
    %31 = vector.load %arg4[%c0_24, %c2, %c0_25, %c0_26] : memref<1x3x8x128xf32, #tpu.memory_space<vmem>>, vector<1x1x8x128xf32>
    %32 = vector.shape_cast %31 : vector<1x1x8x128xf32> to vector<8x128xf32>
    %33 = arith.addf %32, %18 : vector<8x128xf32>
    %c0_27 = arith.constant 0 : index
    %c2_28 = arith.constant 2 : index
    %c0_29 = arith.constant 0 : index
    %c0_30 = arith.constant 0 : index
    %34 = vector.load %arg4[%c0_27, %c2_28, %c0_29, %c0_30] : memref<1x3x8x128xf32, #tpu.memory_space<vmem>>, vector<1x1x8x128xf32>
    %35 = vector.shape_cast %34 : vector<1x1x8x128xf32> to vector<8x128xf32>
    %36 = vector.shape_cast %33 : vector<8x128xf32> to vector<1x1x8x128xf32>
    tpu.vector_store %arg4[%c0_27, %c2_28, %c0_29, %c0_30], %36 {strides = array<i32>} : memref<1x3x8x128xf32, #tpu.memory_space<vmem>>, vector<1x1x8x128xf32>,
    return
  }
  func.func @transform_0(%arg0: i32, %arg1: i32) -> (i32, i32) {
    %c1_i32 = arith.constant 1 : i32
    %0 = arith.muli %arg0, %c1_i32 : i32
    %1 = arith.addi %0, %arg1 : i32
    %c0_i32 = arith.constant 0 : i32
    %c0_i32_0 = arith.constant 0 : i32
    return %1, %c0_i32 : i32, i32
  }
  func.func @transform_1(%arg0: i32, %arg1: i32) -> (i32, i32) {
    %c1_i32 = arith.constant 1 : i32
    %0 = arith.muli %arg0, %c1_i32 : i32
    %1 = arith.addi %0, %arg1 : i32
    %c0_i32 = arith.constant 0 : i32
    %c0_i32_0 = arith.constant 0 : i32
    return %1, %c0_i32 : i32, i32
  }
  func.func @transform_2(%arg0: i32, %arg1: i32) -> (i32, i32, i32, i32) {
    %c0_i32 = arith.constant 0 : i32
    %c0_i32_0 = arith.constant 0 : i32
    %c0_i32_1 = arith.constant 0 : i32
    %c0_i32_2 = arith.constant 0 : i32
    return %arg0, %c0_i32, %c0_i32_0, %c0_i32_1 : i32, i32, i32, i32
  }
}

</mosaic_0001>

<bundles_post_ra>
// kernel: tpu_custom_call.1
= control target key start
LH: loop header
LB: loop body
LE: loop exit
PB: predicated region body
PF: predicated region fallthrough
CT: control target
= control target key end

     0   :  { %7 = vsyncpa [#allocation3], 0  ;;  %s219_s0 = inlined_call_operand.hbm [shape: f32[16,128], index: 0, kind: input, shape index: {}]   ;;  %s220_s1 = inlined_call_operand.hbm [shape: f32[16,128], index: 1, kind: input, shape index: {}]   ;;  %s221_s2 = inlined_call_operand.hbm [shape: f32[1,3,8,128], index: 2, kind: output, shape index: {}]  }
   0x1   :  { %8 = vsyncpa [#allocation6], 0 }
   0x2   :  { %9 = vsyncpa [#allocation4], 0  ;;  %s181_s9 = smov [#allocation2]  }
   0x3   :  { %s19_s10 = sshll.u32 %s181_s9, 4  ;;  %s20_s10 = int_to_ptr.vmem [resolvable:$true] %s19_s10 }
   0x4   :  { %s123_s11 = scalar_lea.vmem %s20_s10, 256  ;;  %p128_p1 = scmp.lt.s32.totalorder %s20_s10, %s20_s10 }
   0x5   :  { %p124_p0 = scmp.ne.s32.totalorder %s20_s10, %s123_s11  ;;  %p129_p2 = scmp.lt.s32.totalorder %s123_s11, %s123_s11 }
   0x7   :  { %p130_p3 = por %p129_p2, %p128_p1 }
   0x9   :  { %p131_p4 = pnand %p130_p3, %p124_p0 }
   0xb   :  { %134 = shalt.err (!%p131_p4)
}
   0xc   :  { %s182_s12 = smov 128   ;;  %s183_s13 = smov 8  }
   0xd   :  { %25 = dma.hbm_to_vmem [thread:$0]  %s219_s0, 256, %s20_s10, [#allocation3], %s182_s12, %s182_s12, %s183_s13  }
   0xe   :  { %s184_s16 = smov [#allocation5]  }
   0xf   :  { %s35_s17 = sshll.u32 %s184_s16, 4  ;;  %s36_s17 = int_to_ptr.vmem [resolvable:$true] %s35_s17 }
  0x10   :  { %s143_s18 = scalar_lea.vmem %s36_s17, 256  ;;  %p148_p6 = scmp.lt.s32.totalorder %s36_s17, %s36_s17 }
  0x11   :  { %p144_p5 = scmp.ne.s32.totalorder %s36_s17, %s143_s18  ;;  %p149_p7 = scmp.lt.s32.totalorder %s143_s18, %s143_s18 }
  0x13   :  { %p150_p8 = por %p149_p7, %p148_p6 }
  0x15   :  { %p151_p9 = pnand %p150_p8, %p144_p5 }
  0x17   :  { %154 = shalt.err (!%p151_p9)
}
  0x18   :  { %41 = dma.hbm_to_vmem [thread:$0]  %s220_s1, 256, %s36_s17, [#allocation6], %s182_s12, %s182_s12, %s183_s13  }
  0x19   :  { %175 = dma.done.wait [#allocation3], 256  }
  0x1a   :  { %176 = vsyncadd [#allocation3], 4294967040 }
  0x1b   :  { %177 = dma.done.wait [#allocation6], 256  }
  0x1c   :  { %178 = vsyncadd [#allocation6], 4294967040  ;;  %v59_v0 = vld [vmem:[#allocation2] sm:$0xff]  ;;  %v60_v1 = vld [vmem:[#allocation2 + $0x8] sm:$0xff]  ;;  %s185_s0 = smov [#allocation7]  }
  0x1d   :  { %v61_v2 = vld [vmem:[#allocation5] sm:$0xff]  ;;  %v62_v3 = vld [vmem:[#allocation5 + $0x8] sm:$0xff]  ;;  %v63_v4 = vmul.f32 0.5, %v59_v0  ;;  %v64_v5 = vmul.f32 0.5, %v60_v1  ;;  %s92_s1 = sshll.u32 %s185_s0, 4  ;;  %s93_s1 = int_to_ptr.vmem [resolvable:$true] %s92_s1 }
  0x1e   :  { %v75_v6 = vadd.f32 %v62_v3, %v61_v2  ;;  %s155_s21 = scalar_lea.vmem %s93_s1, 384  ;;  %p160_p11 = scmp.lt.s32.totalorder %s93_s1, %s93_s1 }
  0x1f   :  { %111 = vtanh.f32 %v63_v4  ;;  %p156_p10 = scmp.ne.s32.totalorder %s93_s1, %s155_s21  ;;  %p161_p12 = scmp.lt.s32.totalorder %s155_s21, %s155_s21 }
  0x20   :  { %113 = vtanh.f32 %v64_v5  ;;  %86 = vst [vmem:[#allocation7 + $0x10] sm:$0xff] %v75_v6 }
  0x21   :  { %p162_p13 = por %p161_p12, %p160_p11 }
  0x23   :  { %p163_p0 = pnand %p162_p13, %p156_p10 }
  0x2c   :  { %v112_v7 = vpop.eup %111 }
  0x2d   :  { %v114_v8 = vpop.eup %113  ;;  %v67_v9 = vmul.f32 0.5, %v112_v7 }
  0x2e   :  { %v68_v10 = vmul.f32 0.5, %v114_v8 }
  0x2f   :  { %v69_v11 = vadd.f32 0.5, %v67_v9 }
  0x30   :  { %v70_v12 = vadd.f32 0.5, %v68_v10 }
  0x31   :  { %v71_v13 = vmul.f32 %v69_v11, %v61_v2 }
  0x32   :  { %v72_v14 = vmul.f32 %v70_v12, %v62_v3  ;;  %v74_v15 = vadd.f32 %v70_v12, %v69_v11 }
  0x34   :  { %v73_v16 = vadd.f32 %v72_v14, %v71_v13  ;;  %82 = vst [vmem:[#allocation7 + $0x8] sm:$0xff] %v74_v15 }
  0x36   :  { %78 = vst [vmem:[#allocation7] sm:$0xff] %v73_v16 }
  0x37   :  { %166 = shalt.err (!%p163_p0)
}
  0x38   :  { %98 = dma.vmem_to_hbm [thread:$0]  %s93_s1, 384, %s221_s2, [#allocation4], %s182_s12, %s182_s12, %s183_s13  }
  0x39   :  { %179 = dma.done.wait [#allocation4], 384  }
  0x3a   :  { %180 = vsyncadd [#allocation4], 4294966912 }
  0x3b   :  { %102 = vsyncpa [#allocation3], 1 }
  0x3c   :  { %103 = vsyncpa [#allocation6], 1 }
  0x3d   :  { %104 = vsyncpa [#allocation4], 1 }

</bundles_post_ra>
